<compile_context>
chip_gen: v7x
topology: tpu7x:2x2x1
jax: 0.10.0
libtpu: 0.0.40
codegen_flags: <defaults>
</compile_context>

<pallas_src>
import functools

import jax
import jax.numpy as jnp
from jax import lax
from jax.experimental import pallas as pl
from jax.experimental.pallas import tpu as pltpu

_LANE = 128
_SUB = 8


def _focal_tversky_kernel(x_ref, t_ref, out_ref, *, n_valid, ragged):
    # x_ref, t_ref: (ts, 128) tile of one batch row, native dtype (cast to f32 here).
    # out_ref: (4, 8, 128) f32 lane-resident accumulator for this batch row:
    #   [0] sum of focal per-element losses, [1] sum(p), [2] sum(t), [3] sum(p * t)
    j = pl.program_id(1)
    x = x_ref[...].astype(jnp.float32)
    t = t_ref[...].astype(jnp.float32)
    ts = x.shape[0]

    # Stable BCE on sigmoid(x) directly from logits: one exp + one log (softplus form),
    # keeping PyTorch F.binary_cross_entropy's clamp at -100 on each log term.
    e = jnp.exp(-jnp.abs(x))                                     # exp(-|x|)
    one_p_e = 1.0 + e
    l = jnp.log(one_p_e)                                         # log(1 + exp(-|x|))
    log_p = jnp.maximum(-(jnp.maximum(-x, 0.0) + l), -100.0)     # log(sigmoid(x))   clamped
    log_1mp = jnp.maximum(-(jnp.maximum(x, 0.0) + l), -100.0)    # log(1-sigmoid(x)) clamped
    bce = -(t * log_p + (1.0 - t) * log_1mp)

    # Keep exp path so soft (non-binary) targets stay faithful to the module.
    pt = jnp.exp(-bce)
    one_m_pt = 1.0 - pt
    f_loss = one_m_pt * one_m_pt * bce                           # alpha=1, gamma=2 (static)

    # sigmoid(x) reusing e; exact divide kept for fidelity of the summed Tversky terms.
    p = jnp.where(x >= 0.0, 1.0, e) / one_p_e

    if ragged:
        # Compiled in only when the tiled axis doesn't divide evenly: mask overhang rows
        # and lane-padding so they contribute exactly zero to every sum.
        row = lax.broadcasted_iota(jnp.int32, (ts, _LANE), 0)
        lane = lax.broadcasted_iota(jnp.int32, (ts, _LANE), 1)
        gidx = (j * ts + row) * _LANE + lane
        valid = gidx < n_valid
        f_loss = jnp.where(valid, f_loss, 0.0)
        p = jnp.where(valid, p, 0.0)
        t = jnp.where(valid, t, 0.0)

    def vreg_rowsum(v):
        # (ts, 128) -> (8, 128): pure VALU vreg adds; no cross-lane (XLU) work per tile.
        return jnp.sum(v.reshape(ts // _SUB, _SUB, _LANE), axis=0)

    s_f = vreg_rowsum(f_loss)
    s_p = vreg_rowsum(p)
    s_t = vreg_rowsum(t)
    s_i = vreg_rowsum(p * t)

    @pl.when(j == 0)
    def _init():
        out_ref[0] = s_f
        out_ref[1] = s_p
        out_ref[2] = s_t
        out_ref[3] = s_i

    @pl.when(j > 0)
    def _accum():
        out_ref[0] += s_f
        out_ref[1] += s_p
        out_ref[2] += s_t
        out_ref[3] += s_i


def focal_tversky_loss(inputs, target, *,
                       alpha=0.7, beta=0.3, gamma=2.0,
                       focal_weight=1.0, tversky_weight=1.0,
                       tile_rows=1024):
    """inputs/target: (B, C, H, W). Returns a scalar float32 loss."""
    assert inputs.ndim == 4, "expected BxCxHxW"
    B = inputs.shape[0]
    N = inputs.shape[1] * inputs.shape[2] * inputs.shape[3]

    # Keep native dtypes in HBM; cast to f32 inside each tile.
    x = inputs.reshape(B, N)
    t = target.reshape(B, N)

    rows = pl.cdiv(N, _LANE)
    # Minimal pad only when N isn't lane-aligned (rare for CxHxW); pad value 0 is safe for
    # any dtype because the kernel masks padded elements to contribute exactly zero.
    lane_pad = rows * _LANE - N
    if lane_pad:
        x = jnp.pad(x, ((0, 0), (0, lane_pad)))
        t = jnp.pad(t, ((0, 0), (0, lane_pad)))
    x = x.reshape(B, rows, _LANE)
    t = t.reshape(B, rows, _LANE)

    tile_rows = max(_SUB, (int(tile_rows) // _SUB) * _SUB)
    ts = min(tile_rows, max(_SUB, pl.cdiv(rows, _SUB) * _SUB))
    n_tiles = pl.cdiv(rows, ts)
    ragged = (N % (ts * _LANE)) != 0   # overhang rows and/or lane padding present

    kernel = functools.partial(_focal_tversky_kernel, n_valid=N, ragged=ragged)

    elems = B * rows * _LANE
    cost = pl.CostEstimate(
        flops=28 * elems,
        transcendentals=4 * elems,
        bytes_accessed=(x.size * x.dtype.itemsize
                        + t.size * t.dtype.itemsize
                        + B * 4 * _SUB * _LANE * 4),
    )

    parts = pl.pallas_call(
        kernel,
        out_shape=jax.ShapeDtypeStruct((B, 4, _SUB, _LANE), jnp.float32),
        grid=(B, n_tiles),
        in_specs=[
            pl.BlockSpec((None, ts, _LANE), lambda b, j: (b, j, 0)),
            pl.BlockSpec((None, ts, _LANE), lambda b, j: (b, j, 0)),
        ],
        # Output is blocked per-b so the batch axis can be safely sharded across
        # TensorCores (v7x megacore); the reduction axis j stays resident/"arbitrary".
        out_specs=pl.BlockSpec((None, 4, _SUB, _LANE), lambda b, j: (b, 0, 0, 0)),
        compiler_params=pltpu.CompilerParams(
            dimension_semantics=("parallel", "arbitrary"),
        ),
        cost_estimate=cost,
    )(x, t)

    # Tiny final combine in JAX: one cross-lane reduce over (B, 4, 8, 128) + Tversky score.
    sums = jnp.sum(parts, axis=(2, 3))          # (B, 4)
    focal = jnp.sum(sums[:, 0]) / (B * N)       # mean over true element count
    inter = sums[:, 3]
    fps = sums[:, 1] - inter
    fns = sums[:, 2] - inter
    score = inter / (inter + alpha * fps + beta * fns + 1e-6)
    tversky = jnp.mean((1.0 - score) ** gamma)
    return focal * focal_weight + tversky * tversky_weight


def _focal_tversky_ref(inputs, target, *, alpha=0.7, beta=0.3, gamma=2.0,
                       focal_weight=1.0, tversky_weight=1.0):
    # Pure-JAX reference mirroring the PyTorch module (sigmoid -> clamped-log BCE).
    B = inputs.shape[0]
    p = jax.nn.sigmoid(inputs.reshape(B, -1).astype(jnp.float32))
    t = target.reshape(B, -1).astype(jnp.float32)
    log_p = jnp.maximum(jnp.log(p), -100.0)
    log_1mp = jnp.maximum(jnp.log(1.0 - p), -100.0)
    bce = -(t * log_p + (1.0 - t) * log_1mp)
    pt = jnp.exp(-bce)
    focal = jnp.mean((1.0 - pt) ** 2.0 * bce)
    inter = jnp.sum(p * t, axis=1)
    fps = jnp.sum(p * (1.0 - t), axis=1)
    fns = jnp.sum((1.0 - p) * t, axis=1)
    score = inter / (inter + alpha * fps + beta * fns + 1e-6)
    tversky = jnp.mean((1.0 - score) ** gamma)
    return focal * focal_weight + tversky * tversky_weight


if __name__ == "__main__":
    key = jax.random.PRNGKey(0)
    k1, k2, k3, k4 = jax.random.split(key, 4)

    # Lane-aligned case: B=2, C=4, H=W=16 -> N=1024.
    x = jax.random.normal(k1, (2, 4, 16, 16), dtype=jnp.float32)              # logits
    tgt = (jax.random.uniform(k2, (2, 4, 16, 16)) > 0.5).astype(jnp.float32)  # binary target
    loss = jax.block_until_ready(focal_tversky_loss(x, tgt))
    ref = _focal_tversky_ref(x, tgt)
    assert jnp.allclose(loss, ref, rtol=1e-4, atol=1e-5), (loss, ref)

    # Ragged case (N=300, not a multiple of 128) exercising in-kernel tail masking.
    xr = jax.random.normal(k3, (2, 3, 10, 10), dtype=jnp.float32)
    tr = (jax.random.uniform(k4, (2, 3, 10, 10)) > 0.5).astype(jnp.float32)
    loss_r = jax.block_until_ready(focal_tversky_loss(xr, tr))
    ref_r = _focal_tversky_ref(xr, tr)
    assert jnp.allclose(loss_r, ref_r, rtol=1e-4, atol=1e-5), (loss_r, ref_r)

    print("KERNEL_OK")
</pallas_src>

<mosaic_0001>
module attributes {stable_mosaic.version = 11 : i64} {
  func.func @_focal_tversky_kernel(%arg0: i32, %arg1: i32, %arg2: memref<1x8x128xf32, #tpu.memory_space<vmem>>, %arg3: memref<1x8x128xf32, #tpu.memory_space<vmem>>, %arg4: memref<1x4x8x128xf32, #tpu.memory_space<vmem>>) attributes {dimension_semantics = [#tpu.dimension_semantics<parallel>, #tpu.dimension_semantics<arbitrary>], iteration_bounds = array<i64: 2, 1>, scalar_prefetch = 0 : i64, scratch_operands = 0 : i64, tpu.core_type = #tpu.core_type<tc>, window_params = [{transform_indices = @transform_0, window_bounds = array<i64: 1, 8, 128>}, {transform_indices = @transform_1, window_bounds = array<i64: 1, 8, 128>}, {transform_indices = @transform_2, window_bounds = array<i64: 1, 4, 8, 128>}]} {
    %c0 = arith.constant 0 : index
    %c0_0 = arith.constant 0 : index
    %c0_1 = arith.constant 0 : index
    %0 = vector.load %arg2[%c0, %c0_0, %c0_1] : memref<1x8x128xf32, #tpu.memory_space<vmem>>, vector<1x8x128xf32>
    %1 = vector.shape_cast %0 : vector<1x8x128xf32> to vector<8x128xf32>
    %c0_2 = arith.constant 0 : index
    %c0_3 = arith.constant 0 : index
    %c0_4 = arith.constant 0 : index
    %2 = vector.load %arg3[%c0_2, %c0_3, %c0_4] : memref<1x8x128xf32, #tpu.memory_space<vmem>>, vector<1x8x128xf32>
    %3 = vector.shape_cast %2 : vector<1x8x128xf32> to vector<8x128xf32>
    %4 = math.absf %1 : vector<8x128xf32>
    %cst = arith.constant 0.000000e+00 : f32
    %5 = vector.broadcast %cst : f32 to vector<8x128xf32>
    %6 = arith.subf %5, %4 : vector<8x128xf32>
    %7 = math.exp %6 : vector<8x128xf32>
    %cst_5 = arith.constant 1.000000e+00 : f32
    %8 = vector.broadcast %cst_5 : f32 to vector<8x128xf32>
    %9 = arith.addf %8, %7 : vector<8x128xf32>
    %10 = math.log %9 : vector<8x128xf32>
    %cst_6 = arith.constant 0.000000e+00 : f32
    %11 = vector.broadcast %cst_6 : f32 to vector<8x128xf32>
    %12 = arith.subf %11, %1 : vector<8x128xf32>
    %cst_7 = arith.constant 0.000000e+00 : f32
    %13 = vector.broadcast %cst_7 : f32 to vector<8x128xf32>
    %14 = arith.maximumf %12, %13 : vector<8x128xf32>
    %15 = arith.addf %14, %10 : vector<8x128xf32>
    %cst_8 = arith.constant 0.000000e+00 : f32
    %16 = vector.broadcast %cst_8 : f32 to vector<8x128xf32>
    %17 = arith.subf %16, %15 : vector<8x128xf32>
    %cst_9 = arith.constant -1.000000e+02 : f32
    %18 = vector.broadcast %cst_9 : f32 to vector<8x128xf32>
    %19 = arith.maximumf %17, %18 : vector<8x128xf32>
    %cst_10 = arith.constant 0.000000e+00 : f32
    %20 = vector.broadcast %cst_10 : f32 to vector<8x128xf32>
    %21 = arith.maximumf %1, %20 : vector<8x128xf32>
    %22 = arith.addf %21, %10 : vector<8x128xf32>
    %cst_11 = arith.constant 0.000000e+00 : f32
    %23 = vector.broadcast %cst_11 : f32 to vector<8x128xf32>
    %24 = arith.subf %23, %22 : vector<8x128xf32>
    %cst_12 = arith.constant -1.000000e+02 : f32
    %25 = vector.broadcast %cst_12 : f32 to vector<8x128xf32>
    %26 = arith.maximumf %24, %25 : vector<8x128xf32>
    %27 = arith.mulf %3, %19 : vector<8x128xf32>
    %cst_13 = arith.constant 1.000000e+00 : f32
    %28 = vector.broadcast %cst_13 : f32 to vector<8x128xf32>
    %29 = arith.subf %28, %3 : vector<8x128xf32>
    %30 = arith.mulf %29, %26 : vector<8x128xf32>
    %31 = arith.addf %27, %30 : vector<8x128xf32>
    %cst_14 = arith.constant 0.000000e+00 : f32
    %32 = vector.broadcast %cst_14 : f32 to vector<8x128xf32>
    %33 = arith.subf %32, %31 : vector<8x128xf32>
    %cst_15 = arith.constant 0.000000e+00 : f32
    %34 = vector.broadcast %cst_15 : f32 to vector<8x128xf32>
    %35 = arith.subf %34, %33 : vector<8x128xf32>
    %36 = math.exp %35 : vector<8x128xf32>
    %cst_16 = arith.constant 1.000000e+00 : f32
    %37 = vector.broadcast %cst_16 : f32 to vector<8x128xf32>
    %38 = arith.subf %37, %36 : vector<8x128xf32>
    %39 = arith.mulf %38, %38 : vector<8x128xf32>
    %40 = arith.mulf %39, %33 : vector<8x128xf32>
    %cst_17 = arith.constant 0.000000e+00 : f32
    %41 = vector.broadcast %cst_17 : f32 to vector<8x128xf32>
    %42 = arith.cmpf oge, %1, %41 : vector<8x128xf32>
    %cst_18 = arith.constant 1.000000e+00 : f32
    %43 = vector.broadcast %cst_18 : f32 to vector<8x128xf32>
    %44 = arith.select %42, %43, %7 : vector<8x128xi1>, vector<8x128xf32>
    %45 = arith.divf %44, %9 : vector<8x128xf32>
    %46 = vector.shape_cast %40 : vector<8x128xf32> to vector<1x8x128xf32>
    %cst_19 = arith.constant dense<0.000000e+00> : vector<8x128xf32>
    %47 = vector.multi_reduction <add>, %46, %cst_19 [0] : vector<1x8x128xf32> to vector<8x128xf32>
    %48 = vector.shape_cast %45 : vector<8x128xf32> to vector<1x8x128xf32>
    %cst_20 = arith.constant dense<0.000000e+00> : vector<8x128xf32>
    %49 = vector.multi_reduction <add>, %48, %cst_20 [0] : vector<1x8x128xf32> to vector<8x128xf32>
    %50 = vector.shape_cast %3 : vector<8x128xf32> to vector<1x8x128xf32>
    %cst_21 = arith.constant dense<0.000000e+00> : vector<8x128xf32>
    %51 = vector.multi_reduction <add>, %50, %cst_21 [0] : vector<1x8x128xf32> to vector<8x128xf32>
    %52 = arith.mulf %45, %3 : vector<8x128xf32>
    %53 = vector.shape_cast %52 : vector<8x128xf32> to vector<1x8x128xf32>
    %cst_22 = arith.constant dense<0.000000e+00> : vector<8x128xf32>
    %54 = vector.multi_reduction <add>, %53, %cst_22 [0] : vector<1x8x128xf32> to vector<8x128xf32>
    %c0_i32 = arith.constant 0 : i32
    %55 = arith.cmpi eq, %arg1, %c0_i32 : i32
    %56 = arith.extui %55 : i1 to i32
    %c0_i32_23 = arith.constant 0 : i32
    %57 = arith.cmpi ne, %56, %c0_i32_23 : i32
    scf.if %57 {
      %c0_26 = arith.constant 0 : index
      %c0_27 = arith.constant 0 : index
      %c0_28 = arith.constant 0 : index
      %c0_29 = arith.constant 0 : index
      %61 = vector.load %arg4[%c0_26, %c0_27, %c0_28, %c0_29] : memref<1x4x8x128xf32, #tpu.memory_space<vmem>>, vector<1x1x8x128xf32>
      %62 = vector.shape_cast %61 : vector<1x1x8x128xf32> to vector<8x128xf32>
      %63 = vector.shape_cast %47 : vector<8x128xf32> to vector<1x1x8x128xf32>
      tpu.vector_store %arg4[%c0_26, %c0_27, %c0_28, %c0_29], %63 {strides = array<i32>} : memref<1x4x8x128xf32, #tpu.memory_space<vmem>>, vector<1x1x8x128xf32>,
      %c0_30 = arith.constant 0 : index
      %c1 = arith.constant 1 : index
      %c0_31 = arith.constant 0 : index
      %c0_32 = arith.constant 0 : index
      %64 = vector.load %arg4[%c0_30, %c1, %c0_31, %c0_32] : memref<1x4x8x128xf32, #tpu.memory_space<vmem>>, vector<1x1x8x128xf32>
      %65 = vector.shape_cast %64 : vector<1x1x8x128xf32> to vector<8x128xf32>
      %66 = vector.shape_cast %49 : vector<8x128xf32> to vector<1x1x8x128xf32>
      tpu.vector_store %arg4[%c0_30, %c1, %c0_31, %c0_32], %66 {strides = array<i32>} : memref<1x4x8x128xf32, #tpu.memory_space<vmem>>, vector<1x1x8x128xf32>,
      %c0_33 = arith.constant 0 : index
      %c2 = arith.constant 2 : index
      %c0_34 = arith.constant 0 : index
      %c0_35 = arith.constant 0 : index
      %67 = vector.load %arg4[%c0_33, %c2, %c0_34, %c0_35] : memref<1x4x8x128xf32, #tpu.memory_space<vmem>>, vector<1x1x8x128xf32>
      %68 = vector.shape_cast %67 : vector<1x1x8x128xf32> to vector<8x128xf32>
      %69 = vector.shape_cast %51 : vector<8x128xf32> to vector<1x1x8x128xf32>
      tpu.vector_store %arg4[%c0_33, %c2, %c0_34, %c0_35], %69 {strides = array<i32>} : memref<1x4x8x128xf32, #tpu.memory_space<vmem>>, vector<1x1x8x128xf32>,
      %c0_36 = arith.constant 0 : index
      %c3 = arith.constant 3 : index
      %c0_37 = arith.constant 0 : index
      %c0_38 = arith.constant 0 : index
      %70 = vector.load %arg4[%c0_36, %c3, %c0_37, %c0_38] : memref<1x4x8x128xf32, #tpu.memory_space<vmem>>, vector<1x1x8x128xf32>
      %71 = vector.shape_cast %70 : vector<1x1x8x128xf32> to vector<8x128xf32>
      %72 = vector.shape_cast %54 : vector<8x128xf32> to vector<1x1x8x128xf32>
      tpu.vector_store %arg4[%c0_36, %c3, %c0_37, %c0_38], %72 {strides = array<i32>} : memref<1x4x8x128xf32, #tpu.memory_space<vmem>>, vector<1x1x8x128xf32>,
    } else {
    }
    %c0_i32_24 = arith.constant 0 : i32
    %58 = arith.cmpi sgt, %arg1, %c0_i32_24 : i32
    %59 = arith.extui %58 : i1 to i32
    %c0_i32_25 = arith.constant 0 : i32
    %60 = arith.cmpi ne, %59, %c0_i32_25 : i32
    scf.if %60 {
      %c0_26 = arith.constant 0 : index
      %c0_27 = arith.constant 0 : index
      %c0_28 = arith.constant 0 : index
      %c0_29 = arith.constant 0 : index
      %61 = vector.load %arg4[%c0_26, %c0_27, %c0_28, %c0_29] : memref<1x4x8x128xf32, #tpu.memory_space<vmem>>, vector<1x1x8x128xf32>
      %62 = vector.shape_cast %61 : vector<1x1x8x128xf32> to vector<8x128xf32>
      %63 = arith.addf %62, %47 : vector<8x128xf32>
      %c0_30 = arith.constant 0 : index
      %c0_31 = arith.constant 0 : index
      %c0_32 = arith.constant 0 : index
      %c0_33 = arith.constant 0 : index
      %64 = vector.load %arg4[%c0_30, %c0_31, %c0_32, %c0_33] : memref<1x4x8x128xf32, #tpu.memory_space<vmem>>, vector<1x1x8x128xf32>
      %65 = vector.shape_cast %64 : vector<1x1x8x128xf32> to vector<8x128xf32>
      %66 = vector.shape_cast %63 : vector<8x128xf32> to vector<1x1x8x128xf32>
      tpu.vector_store %arg4[%c0_30, %c0_31, %c0_32, %c0_33], %66 {strides = array<i32>} : memref<1x4x8x128xf32, #tpu.memory_space<vmem>>, vector<1x1x8x128xf32>,
      %c0_34 = arith.constant 0 : index
      %c1 = arith.constant 1 : index
      %c0_35 = arith.constant 0 : index
      %c0_36 = arith.constant 0 : index
      %67 = vector.load %arg4[%c0_34, %c1, %c0_35, %c0_36] : memref<1x4x8x128xf32, #tpu.memory_space<vmem>>, vector<1x1x8x128xf32>
      %68 = vector.shape_cast %67 : vector<1x1x8x128xf32> to vector<8x128xf32>
      %69 = arith.addf %68, %49 : vector<8x128xf32>
      %c0_37 = arith.constant 0 : index
      %c1_38 = arith.constant 1 : index
      %c0_39 = arith.constant 0 : index
      %c0_40 = arith.constant 0 : index
      %70 = vector.load %arg4[%c0_37, %c1_38, %c0_39, %c0_40] : memref<1x4x8x128xf32, #tpu.memory_space<vmem>>, vector<1x1x8x128xf32>
      %71 = vector.shape_cast %70 : vector<1x1x8x128xf32> to vector<8x128xf32>
      %72 = vector.shape_cast %69 : vector<8x128xf32> to vector<1x1x8x128xf32>
      tpu.vector_store %arg4[%c0_37, %c1_38, %c0_39, %c0_40], %72 {strides = array<i32>} : memref<1x4x8x128xf32, #tpu.memory_space<vmem>>, vector<1x1x8x128xf32>,
      %c0_41 = arith.constant 0 : index
      %c2 = arith.constant 2 : index
      %c0_42 = arith.constant 0 : index
      %c0_43 = arith.constant 0 : index
      %73 = vector.load %arg4[%c0_41, %c2, %c0_42, %c0_43] : memref<1x4x8x128xf32, #tpu.memory_space<vmem>>, vector<1x1x8x128xf32>
      %74 = vector.shape_cast %73 : vector<1x1x8x128xf32> to vector<8x128xf32>
      %75 = arith.addf %74, %51 : vector<8x128xf32>
      %c0_44 = arith.constant 0 : index
      %c2_45 = arith.constant 2 : index
      %c0_46 = arith.constant 0 : index
      %c0_47 = arith.constant 0 : index
      %76 = vector.load %arg4[%c0_44, %c2_45, %c0_46, %c0_47] : memref<1x4x8x128xf32, #tpu.memory_space<vmem>>, vector<1x1x8x128xf32>
      %77 = vector.shape_cast %76 : vector<1x1x8x128xf32> to vector<8x128xf32>
      %78 = vector.shape_cast %75 : vector<8x128xf32> to vector<1x1x8x128xf32>
      tpu.vector_store %arg4[%c0_44, %c2_45, %c0_46, %c0_47], %78 {strides = array<i32>} : memref<1x4x8x128xf32, #tpu.memory_space<vmem>>, vector<1x1x8x128xf32>,
      %c0_48 = arith.constant 0 : index
      %c3 = arith.constant 3 : index
      %c0_49 = arith.constant 0 : index
      %c0_50 = arith.constant 0 : index
      %79 = vector.load %arg4[%c0_48, %c3, %c0_49, %c0_50] : memref<1x4x8x128xf32, #tpu.memory_space<vmem>>, vector<1x1x8x128xf32>
      %80 = vector.shape_cast %79 : vector<1x1x8x128xf32> to vector<8x128xf32>
      %81 = arith.addf %80, %54 : vector<8x128xf32>
      %c0_51 = arith.constant 0 : index
      %c3_52 = arith.constant 3 : index
      %c0_53 = arith.constant 0 : index
      %c0_54 = arith.constant 0 : index
      %82 = vector.load %arg4[%c0_51, %c3_52, %c0_53, %c0_54] : memref<1x4x8x128xf32, #tpu.memory_space<vmem>>, vector<1x1x8x128xf32>
      %83 = vector.shape_cast %82 : vector<1x1x8x128xf32> to vector<8x128xf32>
      %84 = vector.shape_cast %81 : vector<8x128xf32> to vector<1x1x8x128xf32>
      tpu.vector_store %arg4[%c0_51, %c3_52, %c0_53, %c0_54], %84 {strides = array<i32>} : memref<1x4x8x128xf32, #tpu.memory_space<vmem>>, vector<1x1x8x128xf32>,
    } else {
    }
    return
  }
  func.func @transform_0(%arg0: i32, %arg1: i32) -> (i32, i32, i32) {
    %c0_i32 = arith.constant 0 : i32
    %c0_i32_0 = arith.constant 0 : i32
    return %arg0, %arg1, %c0_i32 : i32, i32, i32
  }
  func.func @transform_1(%arg0: i32, %arg1: i32) -> (i32, i32, i32) {
    %c0_i32 = arith.constant 0 : i32
    %c0_i32_0 = arith.constant 0 : i32
    return %arg0, %arg1, %c0_i32 : i32, i32, i32
  }
  func.func @transform_2(%arg0: i32, %arg1: i32) -> (i32, i32, i32, i32) {
    %c0_i32 = arith.constant 0 : i32
    %c0_i32_0 = arith.constant 0 : i32
    %c0_i32_1 = arith.constant 0 : i32
    %c0_i32_2 = arith.constant 0 : i32
    return %arg0, %c0_i32, %c0_i32_0, %c0_i32_1 : i32, i32, i32, i32
  }
}

</mosaic_0001>

<bundles_post_ra>
// kernel: tpu_custom_call.1
= control target key start
LH: loop header
LB: loop body
LE: loop exit
PB: predicated region body
PF: predicated region fallthrough
CT: control target
= control target key end

     0   :  { %7 = vsyncpa [#allocation3], 0  ;;  %s904_s0 = inlined_call_operand.hbm [shape: f32[2,8,128], index: 0, kind: input, shape index: {}]   ;;  %s905_s1 = inlined_call_operand.hbm [shape: f32[2,8,128], index: 1, kind: input, shape index: {}]   ;;  %s906_s2 = inlined_call_operand.hbm [shape: f32[2,4,8,128], index: 2, kind: output, shape index: {}]  }
   0x1   :  { %9 = vsyncpa [#allocation3 + $0x1], 0 }
   0x2   :  { %10 = vsyncpa [#allocation6], 0 }
   0x3   :  { %12 = vsyncpa [#allocation6 + $0x1], 0 }
   0x4   :  { %13 = vsyncpa [#allocation4], 0 }
   0x5   :  { %15 = vsyncpa [#allocation4 + $0x1], 0  ;;  %s674_s9 = smov 0   ;;  %s676_s10 = smov 0  }
   0x6   :  { %s678_s11 = smov 0   ;;  %s680_s12 = smov 0  }
   0x7   :  { %s682_s13 = smov 0   ;;  %s684_s14 = smov 0  }
   0x8 LB: > { %s402_s15 = sadd.s32 4294967295, %s652_s14   ;;  %s403_s16 = sadd.s32 4294967294, %s652_s14   ;;  %s652_s14 = sphi %s684_s14, %s21_s14   ;;  %s648_s13 = sphi %s682_s13, %s926_s13   ;;  %s644_s12 = sphi %s680_s12, %s925_s12   ;;  %s640_s11 = sphi %s678_s11, %s924_s11   ;;  %s636_s10 = sphi %s676_s10, %s923_s10   ;;  %s632_s9 = sphi %s674_s9, %s922_s9  }
   0x9   : > { %s33_s17 = sadd.s32 1, %s648_s13  ;;  %s42_s18 = sadd.s32 1, %s640_s11 }
   0xa   : > { %p35_p0 = scmp.ge.s32.totalorder %s33_s17, 2  ;;  %p49_p1 = scmp.ne.s32.totalorder %s640_s11, %s636_s10 }
   0xb   : > { %p50_p2 = scmp.eq.s32.totalorder %s652_s14, 0  ;;  %p55_p3 = scmp.ne.s32.totalorder %s636_s10, %s632_s9 }
   0xc   : > { %s928_s17 = smov (%p35_p0, %s33_s17), 0  ;;  %p56_p5 = scmp.eq.s32.totalorder %s402_s15, 0 }
   0xd   : > { %p715_p4 = por %p50_p2, %p49_p1  ;;  %s37_s20 = ssub.s32 %s648_s13, %s928_s17 }
   0xe   : > { %p107_p6 = scmp.eq.s32.totalorder %s402_s15, 1  ;;  %p40_p7 = scmp.eq.s32.totalorder %s37_s20, 0 }
   0xf   : > { %p721_p8 = por %p56_p5, %p55_p3  ;;  %p113_p10 = scmp.eq.s32.totalorder %s403_s16, 1 }
  0x10   : > { %p725_p9 = por %p107_p6, %p49_p1  ;;  %p446_p13 = scmp.lt.s32.totalorder %s652_s14, 2 }
  0x11   : > { %s910_s21 = scalar_select %p721_p8, 1, 0 }
  0x12   : > { %s911_s22 = scalar_select %p725_p9, 1, 0 }
  0x13   : > { %s730_s23 = scalar_select %p40_p7, %s640_s11, %s42_s18  }
  0x14   : > { %p732_p11 = por %p113_p10, %p55_p3  ;;  %s739_s25 = sand.u32 1, %s640_s11  }
  0x15   : > { %s406_s26 = sshll.u32 %s739_s25, 3  ;;  %s407_s27 = sshll.u32 %s648_s13, 7 }
  0x16   : > { %s912_s24 = scalar_select %p732_p11, 1, 0 }
  0x17   : > { %s748_s30 = scalar_lea.hbm %s904_s0, %s407_s27  ;;  %s137_s3 = scalar_lea.vmem [#allocation2], %s406_s26 }
  0x18   : > { %s145_s4 = sshll.u32 %s137_s3, 4  ;;  %p756_p0 = pnand %p446_p13, %p715_p4  ;;  %s752_s4 = int_to_ptr.vmem [resolvable:$true] %s145_s4 }
  0x19   : > { %s134_s6 = scalar_lea.sflag [#allocation3], %s739_s25  ;;  %s506_s7 = scalar_lea.hbm %s748_s30, 128 }
  0x1a   : > { %p507_p3 = scmp.ne.s32.totalorder %s748_s30, %s506_s7  ;;  %p508_p5 = pneg %p756_p0 }
  0x1b   : > { %s511_s16 = scalar_lea.hbm %s904_s0, 256  ;;  %p512_p4 = scmp.lt.u32.totalorder %s748_s30, %s904_s0 }
  0x1c   : > { %p509_p6 = pnand %p508_p5, %p507_p3  ;;  %p513_p10 = scmp.lt.u32.totalorder %s511_s16, %s506_s7 }
  0x1d   : > { %p515_p12 = scmp.lt.u32.totalorder %s506_s7, %s748_s30 }
  0x1e   : > { %p510_p7 = pneg %p509_p6  ;;  %p514_p13 = por %p513_p10, %p512_p4 }
  0x20   : > { %p516_p1 = por %p515_p12, %p514_p13 }
  0x22   : > { %p517_p2 = pnand %p516_p1, %p510_p7 }
  0x24   : > { %520 = shalt.err (!%p517_p2)
}
  0x25   : > { %s521_s20 = scalar_lea.vmem %s752_s4, 128  ;;  %s654_s28 = smov [#allocation2]  }
  0x26   : > { %p522_p3 = scmp.ne.s32.totalorder %s752_s4, %s521_s20  ;;  %s526_s29 = sshll.u32 %s654_s28, 4  ;;  %s527_s29 = int_to_ptr.vmem [resolvable:$false] %s526_s29 }
  0x27   : > { %s528_s3 = scalar_lea.vmem %s527_s29, 256  ;;  %p529_p9 = scmp.lt.s32.totalorder %s752_s4, %s527_s29 }
  0x28   : > { %p524_p6 = pnand %p522_p3, %p508_p5  ;;  %p530_p4 = scmp.lt.s32.totalorder %s528_s3, %s521_s20 }
  0x2a   : > { %p525_p11 = pneg %p524_p6  ;;  %p531_p10 = por %p530_p4, %p529_p9 }
  0x2c   : > { %p532_p12 = pnand %p531_p10, %p525_p11 }
  0x2e   : > { %535 = shalt.err (!%p532_p12)
}
  0x2f   : > { %438 = dma.hbm_to_vmem [thread:$0]  (!%p756_p0), %s748_s30, 128, %s752_s4, %s134_s6  }
  0x30   : > { %p914_p1 = scmp.lt.s32.totalorder %s652_s14, 3  ;;  %p915_p2 = scmp.ge.s32.totalorder %s652_s14, 1 }
  0x31   : > { %s801_s16 = scalar_lea.hbm %s905_s1, %s407_s27  ;;  %s156_s18 = scalar_lea.vmem [#allocation5], %s406_s26 }
  0x32   : > { %p792_p7 = pnand %p915_p2, %p914_p1  ;;  %s164_s19 = sshll.u32 %s156_s18, 4  ;;  %s165_s19 = int_to_ptr.vmem [resolvable:$true] %s164_s19 }
  0x33   : > { %s153_s30 = scalar_lea.sflag [#allocation6], %s739_s25  ;;  %s536_s4 = scalar_lea.hbm %s801_s16, 128 }
  0x34   : > { %s916_s7 = scalar_select %p792_p7, 1, 0 }
  0x35   : > { %p537_p9 = scmp.ne.s32.totalorder %s801_s16, %s536_s4  ;;  %s541_s27 = scalar_lea.hbm %s905_s1, 256 }
  0x36   : > { %p542_p3 = scmp.lt.u32.totalorder %s801_s16, %s905_s1  ;;  %p543_p6 = scmp.lt.u32.totalorder %s541_s27, %s536_s4 }
  0x37   : > { %p539_p11 = pnand %p537_p9, %p508_p5  ;;  %p545_p10 = scmp.lt.u32.totalorder %s536_s4, %s801_s16 }
  0x38   : > { %p544_p4 = por %p543_p6, %p542_p3 }
  0x39   : > { %p540_p13 = pneg %p539_p11 }
  0x3a   : > { %p546_p12 = por %p545_p10, %p544_p4 }
  0x3c   : > { %p547_p1 = pnand %p546_p12, %p540_p13 }
  0x3e   : > { %550 = shalt.err (!%p547_p1)
}
  0x3f   : > { %s551_s25 = scalar_lea.vmem %s165_s19, 128  ;;  %s655_s26 = smov [#allocation5]  }
  0x40   : > { %p552_p2 = scmp.ne.s32.totalorder %s165_s19, %s551_s25  ;;  %s556_s3 = sshll.u32 %s655_s26, 4  ;;  %s557_s3 = int_to_ptr.vmem [resolvable:$false] %s556_s3 }
  0x41   : > { %s558_s8 = scalar_lea.vmem %s557_s3, 256  ;;  %p559_p8 = scmp.lt.s32.totalorder %s165_s19, %s557_s3 }
  0x42   : > { %p554_p9 = pnand %p552_p2, %p508_p5  ;;  %p560_p7 = scmp.lt.s32.totalorder %s558_s8, %s551_s25 }
  0x44   : > { %p555_p11 = pneg %p554_p9  ;;  %p561_p3 = por %p560_p7, %p559_p8 }
  0x46   : > { %p562_p6 = pnand %p561_p3, %p555_p11 }
  0x48   : > { %565 = shalt.err (!%p562_p6)
}
  0x49   : > { %441 = dma.hbm_to_vmem [thread:$0]  (!%p756_p0), %s801_s16, 128, %s165_s19, %s153_s30  }
  0x4a   : > { %p917_p13 = scmp.ne.s32.totalorder %s916_s7, 0 }
  0x4b   : > { %s828_s15 = sand.u32 (!%p917_p13), 1, %s636_s10   ;;  %p918_p5 = scmp.ne.s32.totalorder (!%p917_p13), %s910_s21, 0 }
  0x4c   : > { %173 = sbr.rel (%p917_p13) target bundleno = 167 (0xa7), region = 28  ;;  %s411_s18 = sshll.u32 (!%p917_p13), %s828_s15, 3 }
  0x4d   : > { %s176_s4 = scalar_lea.sflag (!%p917_p13), [#allocation3], %s828_s15  ;;  %s179_s6 = scalar_lea.vmem (!%p917_p13), [#allocation2], %s411_s18 }
  0x53   : > { %619 = dma.done.wait (%p918_p5), %s176_s4, 128  }
  0x54   : > { %621 = vsyncadd (%p918_p5), %s176_s4, 4294967168  ;;  %s185_s5 = scalar_lea.sflag [#allocation6], %s828_s15  ;;  %s188_s16 = scalar_lea.vmem [#allocation5], %s411_s18 }
  0x55   : > { %623 = dma.done.wait (%p918_p5), %s185_s5, 128  }
  0x56   : > { %625 = vsyncadd (%p918_p5), %s185_s5, 4294967168  ;;  %s413_s7 = sshll.u32 %s828_s15, 5  ;;  %v214_v0 = vld [vmem:[%s179_s6] sm:$0xff]  ;;  %v215_v1 = vld [vmem:[%s188_s16] sm:$0xff]  ;;  %s428_s30 = sshll.u32 %s644_s12, 9 }
  0x57   : > { %v216_v2 = vand.u32 2147483647, %v214_v0  ;;  %s842_s19 = scalar_lea.vmem [#allocation7], %s413_s7  ;;  %v223_v7 = vsub.f32 0.0, %v214_v0  ;;  %vm243_vm0 = vcmp.ge.f32.partialorder %v214_v0, 0.0  ;;  %v228_v9 = vmax.f32 %v214_v0, 0.0  ;;  %s854_s28 = scalar_lea.hbm %s906_s2, %s428_s30 }
  0x58   : > { %415 = vst [vmem:[%s842_s19 + $0x10] sm:$0xff] %v215_v1  ;;  %v233_v20 = vsub.f32 1.0, %v215_v1  ;;  %s296_s21 = sshll.u32 %s842_s19, 4  ;;  %s283_s29 = scalar_lea.sflag [#allocation4], %s828_s15  ;;  %s849_s21 = int_to_ptr.vmem [resolvable:$true] %s296_s21 }
  0x59   : > { %v217_v3 = vsub.f32 0.0, %v216_v2  ;;  %v224_v8 = vmax.f32 %v223_v7, 0.0  ;;  %s566_s25 = scalar_lea.vmem %s849_s21, 512  ;;  %p919_p0 = scmp.ne.s32.totalorder %s911_s22, 0 }
  0x5a   : > { %p567_p8 = scmp.ne.s32.totalorder %s849_s21, %s566_s25  ;;  %s656_s12 = smov [#allocation7]  }
  0x5b   : > { %v218_v4 = vmul.f32 1.442695, %v217_v3  ;;  %s570_s26 = sshll.u32 %s656_s12, 4  ;;  %s571_s26 = int_to_ptr.vmem [resolvable:$false] %s570_s26 }
  0x5c   : > { %p568_p7 = pnand %p567_p8, %p919_p0  ;;  %s572_s3 = scalar_lea.vmem %s571_s26, 1024 }
  0x5d   : > { %498 = vpow2.f32 %v218_v4  ;;  %p573_p10 = scmp.lt.s32.totalorder %s849_s21, %s571_s26  ;;  %p574_p12 = scmp.lt.s32.totalorder %s572_s3, %s566_s25 }
  0x5e   : > { %p569_p4 = pneg %p568_p7 }
  0x5f   : > { %p575_p1 = por %p574_p12, %p573_p10 }
  0x61   : > { %p576_p2 = pnand %p575_p1, %p569_p4 }
  0x67   : > { %v499_v5 = vpop.eup %498 }
  0x68   : > { %v220_v6 = vadd.f32 1.0, %v499_v5  ;;  %v244_v10 = vsel %vm243_vm0, 1.0, %v499_v5 }
  0x6a   : > { %500 = vlog2.f32 %v220_v6 }
  0x6b   : > { %502 = vrcp.f32 %v220_v6 }
  0x74   : > { %v501_v11 = vpop.eup %500 }
  0x75   : > { %v503_v12 = vpop.eup %502  ;;  %v222_v13 = vmul.f32 0.6931472, %v501_v11 }
  0x76   : > { %v246_v14 = vmul.f32 %v503_v12, %v244_v10 }
  0x77   : > { %v225_v15 = vadd.f32 %v224_v8, %v222_v13  ;;  %v229_v16 = vadd.f32 %v228_v9, %v222_v13 }
  0x78   : > { %414 = vst [vmem:[%s842_s19 + $0x8] sm:$0xff] %v246_v14  ;;  %v250_v17 = vmul.f32 %v246_v14, %v215_v1 }
  0x79   : > { %v226_v18 = vsub.f32 0.0, %v225_v15  ;;  %v230_v19 = vsub.f32 0.0, %v229_v16 }
  0x7a   : > { %416 = vst [vmem:[%s842_s19 + $0x18] sm:$0xff] %v250_v17 }
  0x7b   : > { %v227_v21 = vmax.f32 %v226_v18, -100.0  ;;  %v231_v22 = vmax.f32 %v230_v19, -100.0 }
  0x7d   : > { %v232_v23 = vmul.f32 %v227_v21, %v215_v1  ;;  %v234_v24 = vmul.f32 %v233_v20, %v231_v22 }
  0x7f   : > { %v235_v25 = vadd.f32 %v234_v24, %v232_v23 }
  0x81   : > { %v236_v26 = vsub.f32 0.0, %v235_v25 }
  0x83   : > { %v237_v27 = vsub.f32 0.0, %v236_v26 }
  0x85   : > { %v238_v28 = vmul.f32 1.442695, %v237_v27 }
  0x87   : > { %504 = vpow2.f32 %v238_v28 }
  0x91   : > { %v505_v29 = vpop.eup %504 }
  0x92   : > { %v240_v30 = vsub.f32 1.0, %v505_v29 }
  0x94   : > { %v241_v31 = vmul.f32 %v240_v30, %v240_v30 }
  0x96   : > { %v242_v32 = vmul.f32 %v241_v31, %v236_v26 }
  0x98   : > { %256 = vst [vmem:[%s842_s19] sm:$0xff] %v242_v32 }
  0x99   : > { %579 = shalt.err (!%p576_p2)
}
  0x9a   : > { %s580_s8 = scalar_lea.hbm %s854_s28, 512  ;;  %s584_s6 = scalar_lea.hbm %s906_s2, 1024 }
  0x9b   : > { %p581_p9 = scmp.ne.s32.totalorder %s854_s28, %s580_s8  ;;  %p585_p6 = scmp.lt.u32.totalorder %s854_s28, %s906_s2 }
  0x9c   : > { %p586_p13 = scmp.lt.u32.totalorder %s584_s6, %s580_s8  ;;  %p588_p8 = scmp.lt.u32.totalorder %s580_s8, %s854_s28 }
  0x9d   : > { %p582_p11 = pnand %p581_p9, %p919_p0 }
  0x9e   : > { %p587_p5 = por %p586_p13, %p585_p6 }
  0x9f   : > { %p583_p3 = pneg %p582_p11 }
  0xa0   : > { %p589_p7 = por %p588_p8, %p587_p5 }
  0xa2   : > { %p590_p4 = pnand %p589_p7, %p583_p3 }
  0xa4   : > { %593 = shalt.err (!%p590_p4)
}
  0xa5   : > { %s657_s7 = smov 128   ;;  %s658_s19 = smov 8  }
  0xa6   : > { %433 = dma.vmem_to_hbm [thread:$0]  (%p919_p0), %s849_s21, 512, %s854_s28, %s283_s29, %s657_s7, %s657_s7, %s658_s19  }
  0xa7 PF: > { %s311_s30 = sand.u32 1, %s632_s9   ;;  %p920_p10 = scmp.ne.s32.totalorder %s912_s24, 0 }
  0xa8   : > { %p921_p12 = scmp.ge.s32.totalorder %s652_s14, 2  ;;  %s312_s20 = scalar_lea.sflag [#allocation4], %s311_s30 }
  0xaa   : > { %p443_p1 = pnand %p921_p12, %p920_p10 }
  0xac   : > { %627 = dma.done.wait (!%p443_p1), %s312_s20, 512  }
  0xad   : > { %629 = vsyncadd (!%p443_p1), %s312_s20, 4294966784  ;;  %s21_s14 = sadd.s32 1, %s652_s14   ;;  %s922_s9 = smov %s636_s10 }
  0xae   : > { %p18_p2 = scmp.ge.s32.totalorder %s21_s14, 4   ;;  %s923_s10 = smov %s640_s11 }
  0xaf   : > { %s924_s11 = smov %s730_s23  ;;  %s925_s12 = smov %s648_s13 }
  0xb0   : > { %s926_s13 = smov %s928_s17  ;;  %20 = sbr.rel (!%p18_p2) target bundleno = 8 (0x8), region = 100 }
  0xb7   :  { %317 = vsyncpa [#allocation3], 1 }
  0xb8   :  { %319 = vsyncpa [#allocation3 + $0x1], 1 }
  0xb9   :  { %320 = vsyncpa [#allocation6], 1 }
  0xba   :  { %322 = vsyncpa [#allocation6 + $0x1], 1 }
  0xbb   :  { %323 = vsyncpa [#allocation4], 1 }
  0xbc   :  { %325 = vsyncpa [#allocation4 + $0x1], 1 }

</bundles_post_ra>
